<compile_context>
chip_gen: v5e
topology: v5e:2x2
jax: 0.10.0
libtpu: 0.0.40
codegen_flags: <defaults>
</compile_context>

<pallas_src>
import jax
import jax.numpy as jnp
from jax.experimental import pallas as pl
from jax.experimental.pallas import tpu as pltpu


def _vgg_loss_kernel(dp_ref, w_ref, out_ref, acc_ref):
    # dp_ref : (TM, Kp)   bf16 im2col'd (sr - hr) patches for this tile
    # w_ref  : (Kp, 64)   bf16 conv weight as a matmul (resident across grid)
    # out_ref: (1, 8, 128) f32 per-core partial sum (scalar broadcast)
    # acc_ref: (1,)       f32 SMEM scalar accumulator
    i = pl.program_id(1)

    @pl.when(i == 0)
    def _():
        acc_ref[0] = jnp.float32(0.0)

    feat = jnp.dot(dp_ref[...], w_ref[...], preferred_element_type=jnp.float32)
    acc_ref[0] += jnp.sum(feat * feat)

    @pl.when(i == pl.num_programs(1) - 1)
    def _():
        out_ref[...] = jnp.full(out_ref.shape, acc_ref[0], dtype=jnp.float32)


def _im2col(d_nhwc, k=3, pad=1):
    """d: (B, H, W, C) -> patches (B*H*W, k*k*C), patch order (kh, kw, c)."""
    B, H, W, C = d_nhwc.shape
    xp = jnp.pad(d_nhwc, ((0, 0), (pad, pad), (pad, pad), (0, 0)))
    cols = [xp[:, di:di + H, dj:dj + W, :] for di in range(k) for dj in range(k)]
    patches = jnp.concatenate(cols, axis=-1)            # (B, H, W, k*k*C)
    return patches.reshape(B * H * W, k * k * C)


def vgg_loss(sr, hr, weight, bias):
    """sr, hr: (B, C, H, W) f32 NCHW.  weight: (64, 3, 3, 3), bias: (64,).

    The conv bias cancels exactly in the feature difference, so it is unused.
    """
    del bias  # cancels: (conv(sr)+b) - (conv(hr)+b) == conv(sr - hr)
    B, C, H, W = sr.shape
    cout = weight.shape[0]

    if C == 1:
        # channel-repeat semantics without 3x input traffic (conv is linear)
        weight = jnp.sum(weight, axis=1, keepdims=True)   # (64, 1, 3, 3)

    # Work only on the difference, in bf16 (f32 accumulation happens on the MXU).
    d = (sr - hr).astype(jnp.bfloat16)
    d = jnp.transpose(d, (0, 2, 3, 1))                    # NHWC
    patches = _im2col(d)                                  # (M, K) bf16
    M, K = patches.shape
    Kp = ((K + 15) // 16) * 16                            # aligned sublane tiles

    # (Cout, Cin, kh, kw) -> (kh, kw, Cin, Cout) -> (K, Cout), matching patch order
    w2d = jnp.transpose(weight, (2, 3, 1, 0)).reshape(K, cout)
    w2d = jnp.pad(w2d, ((0, Kp - K), (0, 0))).astype(jnp.bfloat16)

    # Tile M; leading parallel axis of 2 splits the reduction across the two
    # v7x TensorCores (harmless sequential iterations on v5e/v6e).
    n_cores = 2
    TM = 2048
    while TM > 8 and n_cores * TM > 2 * M:
        TM //= 2
    chunk = n_cores * TM
    M_pad = ((M + chunk - 1) // chunk) * chunk
    n_i = M_pad // chunk

    # zero rows / zero K-padding contribute exactly 0 to the sum of squares
    patches = jnp.pad(patches, ((0, M_pad - M), (0, Kp - K)))

    cost = pl.CostEstimate(
        flops=2 * M_pad * Kp * cout + 2 * M_pad * cout,
        transcendentals=0,
        bytes_accessed=M_pad * Kp * 2 + Kp * cout * 2 + n_cores * 8 * 128 * 4,
    )

    partial = pl.pallas_call(
        _vgg_loss_kernel,
        out_shape=jax.ShapeDtypeStruct((n_cores, 8, 128), jnp.float32),
        grid=(n_cores, n_i),
        in_specs=[
            pl.BlockSpec((TM, Kp), lambda c, i: (c * n_i + i, 0)),
            pl.BlockSpec((Kp, cout), lambda c, i: (0, 0)),   # weight resident
        ],
        out_specs=pl.BlockSpec((1, 8, 128), lambda c, i: (c, 0, 0)),
        scratch_shapes=[pltpu.SMEM((1,), jnp.float32)],
        compiler_params=pltpu.CompilerParams(
            dimension_semantics=("parallel", "arbitrary")),
        cost_estimate=cost,
    )(patches, w2d)

    n_elems = B * cout * H * W          # what PyTorch's MSELoss averages over
    return jnp.sum(partial[:, 0, 0]) / jnp.float32(n_elems)


if __name__ == "__main__":
    key = jax.random.PRNGKey(0)
    k_sr, k_hr, k_w, k_b, k_g1, k_g2 = jax.random.split(key, 6)

    # TODO(synk): the real module loads pretrained VGG19 features[0] weights;
    # deterministic synthetic Conv2d(3, 64, 3, pad=1) parameters are used here.
    weight = 0.05 * jax.random.normal(k_w, (64, 3, 3, 3), dtype=jnp.float32)
    bias = 0.01 * jax.random.normal(k_b, (64,), dtype=jnp.float32)

    def ref_loss(sr, hr):
        if sr.shape[1] == 1:
            sr = jnp.tile(sr, (1, 3, 1, 1))
            hr = jnp.tile(hr, (1, 3, 1, 1))
        feat = lambda x: jax.lax.conv_general_dilated(
            x, weight, window_strides=(1, 1), padding=((1, 1), (1, 1)),
            dimension_numbers=("NCHW", "OIHW", "NCHW")) + bias[None, :, None, None]
        return jnp.mean((feat(sr) - feat(hr)) ** 2)

    # RGB case
    B, C, H, W = 2, 3, 16, 16
    sr = jax.random.normal(k_sr, (B, C, H, W), dtype=jnp.float32)
    hr = jax.random.normal(k_hr, (B, C, H, W), dtype=jnp.float32)
    loss = jax.block_until_ready(vgg_loss(sr, hr, weight, bias))
    ref = ref_loss(sr, hr)
    assert jnp.allclose(loss, ref, rtol=3e-2, atol=1e-4), (loss, ref)

    # grayscale case (channel-repeat semantics, handled via weight folding)
    sr1 = jax.random.normal(k_g1, (1, 1, 8, 8), dtype=jnp.float32)
    hr1 = jax.random.normal(k_g2, (1, 1, 8, 8), dtype=jnp.float32)
    loss1 = jax.block_until_ready(vgg_loss(sr1, hr1, weight, bias))
    ref1 = ref_loss(sr1, hr1)
    assert jnp.allclose(loss1, ref1, rtol=3e-2, atol=1e-4), (loss1, ref1)

    print("KERNEL_OK")
</pallas_src>

<mosaic_0001>
module attributes {stable_mosaic.version = 11 : i64} {
  func.func @_vgg_loss_kernel(%arg0: i32, %arg1: i32, %arg2: memref<512x32xbf16, #tpu.memory_space<vmem>>, %arg3: memref<32x64xbf16, #tpu.memory_space<vmem>>, %arg4: memref<1x8x128xf32, #tpu.memory_space<vmem>>, %arg5: memref<1xf32, #tpu.memory_space<smem>>) attributes {dimension_semantics = [#tpu.dimension_semantics<parallel>, #tpu.dimension_semantics<arbitrary>], iteration_bounds = array<i64: 2, 1>, scalar_prefetch = 0 : i64, scratch_operands = 1 : i64, tpu.core_type = #tpu.core_type<tc>, window_params = [{transform_indices = @transform_0, window_bounds = array<i64: 512, 32>}, {pipeline_mode = #tpu.pipeline_mode<synchronous>, transform_indices = @transform_1, window_bounds = array<i64: 32, 64>}, {transform_indices = @transform_2, window_bounds = array<i64: 1, 8, 128>}]} {
    %c0_i32 = arith.constant 0 : i32
    %0 = arith.cmpi eq, %arg1, %c0_i32 : i32
    %1 = arith.extui %0 : i1 to i32
    %c0_i32_0 = arith.constant 0 : i32
    %2 = arith.cmpi ne, %1, %c0_i32_0 : i32
    scf.if %2 {
      %cst_9 = arith.constant 0.000000e+00 : f32
      %c0_10 = arith.constant 0 : index
      %17 = memref.load %arg5[%c0_10] : memref<1xf32, #tpu.memory_space<smem>>
      memref.store %cst_9, %arg5[%c0_10] : memref<1xf32, #tpu.memory_space<smem>>
    } else {
    }
    %c0 = arith.constant 0 : index
    %c0_1 = arith.constant 0 : index
    %3 = vector.load %arg2[%c0, %c0_1] : memref<512x32xbf16, #tpu.memory_space<vmem>>, vector<512x32xbf16>
    %c0_2 = arith.constant 0 : index
    %c0_3 = arith.constant 0 : index
    %4 = vector.load %arg3[%c0_2, %c0_3] : memref<32x64xbf16, #tpu.memory_space<vmem>>, vector<32x64xbf16>
    %cst = arith.constant dense<0.000000e+00> : vector<512x64xf32>
    %5 = tpu.matmul %3, %4, %cst {dimension_numbers = #tpu.dot_dimension_numbers<[1], [0], [0], [1], [0, 0, 1, 1], [], []>} : vector<512x32xbf16>, vector<32x64xbf16>, vector<512x64xf32> -> vector<512x64xf32>
    %c0_4 = arith.constant 0 : index
    %6 = memref.load %arg5[%c0_4] : memref<1xf32, #tpu.memory_space<smem>>
    %7 = arith.mulf %5, %5 : vector<512x64xf32>
    %8 = vector.shape_cast %7 : vector<512x64xf32> to vector<1x512x64xf32>
    %cst_5 = arith.constant dense<0.000000e+00> : vector<1xf32>
    %9 = vector.multi_reduction <add>, %8, %cst_5 [1, 2] : vector<1x512x64xf32> to vector<1xf32>
    %10 = vector.shape_cast %9 : vector<1xf32> to vector<1x1x1xf32>
    %11 = vector.extract %10[0, 0, 0] : f32 from vector<1x1x1xf32>
    %12 = arith.addf %6, %11 : f32
    %c0_6 = arith.constant 0 : index
    %13 = memref.load %arg5[%c0_6] : memref<1xf32, #tpu.memory_space<smem>>
    memref.store %12, %arg5[%c0_6] : memref<1xf32, #tpu.memory_space<smem>>
    %c0_i32_7 = arith.constant 0 : i32
    %14 = arith.cmpi eq, %arg1, %c0_i32_7 : i32
    %15 = arith.extui %14 : i1 to i32
    %c0_i32_8 = arith.constant 0 : i32
    %16 = arith.cmpi ne, %15, %c0_i32_8 : i32
    scf.if %16 {
      %c0_9 = arith.constant 0 : index
      %17 = memref.load %arg5[%c0_9] : memref<1xf32, #tpu.memory_space<smem>>
      %18 = vector.broadcast %17 : f32 to vector<1x8x128xf32>
      %c0_10 = arith.constant 0 : index
      %c0_11 = arith.constant 0 : index
      %c0_12 = arith.constant 0 : index
      %19 = vector.load %arg4[%c0_10, %c0_11, %c0_12] : memref<1x8x128xf32, #tpu.memory_space<vmem>>, vector<1x8x128xf32>
      tpu.vector_store %arg4[%c0_10, %c0_11, %c0_12], %18 {strides = array<i32>} : memref<1x8x128xf32, #tpu.memory_space<vmem>>, vector<1x8x128xf32>,
    } else {
    }
    return
  }
  func.func @transform_0(%arg0: i32, %arg1: i32) -> (i32, i32) {
    %c1_i32 = arith.constant 1 : i32
    %0 = arith.muli %arg0, %c1_i32 : i32
    %1 = arith.addi %0, %arg1 : i32
    %c0_i32 = arith.constant 0 : i32
    %c0_i32_0 = arith.constant 0 : i32
    return %1, %c0_i32 : i32, i32
  }
  func.func @transform_1(%arg0: i32, %arg1: i32) -> (i32, i32) {
    %c0_i32 = arith.constant 0 : i32
    %c0_i32_0 = arith.constant 0 : i32
    %c0_i32_1 = arith.constant 0 : i32
    return %c0_i32, %c0_i32_0 : i32, i32
  }
  func.func @transform_2(%arg0: i32, %arg1: i32) -> (i32, i32, i32) {
    %c0_i32 = arith.constant 0 : i32
    %c0_i32_0 = arith.constant 0 : i32
    %c0_i32_1 = arith.constant 0 : i32
    return %arg0, %c0_i32, %c0_i32_0 : i32, i32, i32
  }
}

</mosaic_0001>

<bundles_post_ra>
// kernel: tpu_custom_call.1
= control target key start
LH: loop header
LB: loop body
LE: loop exit
PB: predicated region body
PF: predicated region fallthrough
CT: control target
= control target key end

     0   :  { %7 = vsyncpa [#allocation4], 0  ;;  %s1710_s0 = inlined_call_operand.vmem [shape: bf16[1024,32], index: 0, kind: input, shape index: {}]   ;;  %s1711_s1 = inlined_call_operand.vmem [shape: bf16[32,64], index: 1, kind: input, shape index: {}]   ;;  %s1712_s2 = inlined_call_operand.hbm [shape: f32[2,8,128], index: 2, kind: output, shape index: {}]  }
   0x1   :  { %9 = vsyncpa [#allocation4 + $0x1], 0  ;;  %s1342_s9 = smov 0   ;;  %s1344_s10 = smov 0  }
   0x2   :  { %s1346_s11 = smov 0   ;;  %s1348_s12 = smov 0  }
   0x3   :  { %s1350_s13 = smov 0   ;;  %s1352_s14 = smov 0  }
   0x4 LB: > { %s970_s15 = sadd.s32 4294967295, %s1325_s14   ;;  %s971_s16 = sadd.s32 4294967294, %s1325_s14   ;;  %s1325_s14 = sphi %s1352_s14, %s15_s14   ;;  %s1321_s13 = sphi %s1350_s13, %s1719_s13   ;;  %s1317_s12 = sphi %s1348_s12, %s1718_s12   ;;  %s1313_s11 = sphi %s1346_s11, %s1717_s11   ;;  %s1309_s10 = sphi %s1344_s10, %s1716_s10   ;;  %s1305_s9 = sphi %s1342_s9, %s1715_s9  }
   0x5   : > { %s27_s17 = sadd.s32 1, %s1321_s13  ;;  %s83_s18 = sadd.s32 1, %s1313_s11 }
   0x6   : > { %p29_p0 = scmp.ge.s32.totalorder %s27_s17, 2  ;;  %p93_p1 = scmp.ne.s32.totalorder %s1313_s11, %s1309_s10 }
   0x7   : > { %p94_p2 = scmp.eq.s32.totalorder %s970_s15, 1  ;;  %p99_p3 = scmp.ne.s32.totalorder %s1309_s10, %s1305_s9 }
   0x8   : > { %s1721_s17 = smov (%p29_p0, %s27_s17), 0  ;;  %p100_p5 = scmp.eq.s32.totalorder %s971_s16, 1 }
   0x9   : > { %p1382_p4 = por %p94_p2, %p93_p1  ;;  %s80_s20 = ssub.s32 %s1321_s13, %s1721_s17 }
   0xa   : > { %p974_p6 = scmp.ge.s32.totalorder %s1325_s14, 1  ;;  %p81_p7 = scmp.eq.s32.totalorder %s80_s20, 0 }
   0xb   : > { %p1389_p8 = por %p100_p5, %p99_p3  ;;  %p132_p9 = scmp.lt.s32.totalorder %s1325_s14, 3 }
   0xc   : > { %s1395_s22 = scalar_select %p81_p7, %s1313_s11, %s83_s18  }
   0xd   : > { %p133_p10 = pnand %p974_p6, %p132_p9 }
   0xe   : > { %s976_s25 = sshll.u32 (!%p133_p10), %s1317_s12, 6  ;;  %s152_s4 = sand.u32 (!%p133_p10), 1, %s1309_s10  }
   0xf   : > { %136 = sbr.rel (%p133_p10) target bundleno = 557 (0x22d), region = 28  ;;  %p157_p11 = scmp.lt.s32.totalorder (!%p133_p10), %s976_s25, 127 }
  0x10   : > { %s975_s5 = sshll.u32 (!%p133_p10), %s152_s4, 3  ;;  %s1147_s6 = sshll.u32 (!%p133_p10), %s1317_s12, 3 }
  0x11   : > { %s898_s15 = scalar_lea.hbm (!%p133_p10), %s1712_s2, %s1147_s6  ;;  %s154_s16 = scalar_lea.vmem (!%p133_p10), [#allocation3], %s975_s5 }
  0x12   : > { %s900_s18 = sshll.u32 (!%p133_p10), %s154_s16, 4  ;;  %s902_s20 = sshll.u32 (!%p133_p10), %s898_s15, 4  ;;  %s901_s18 = int_to_ptr.vmem [resolvable:$true] %s900_s18  ;;  %s903_s20 = int_to_ptr.hbm [resolvable:$true] %s902_s20 }
  0x13   : > { %s888_s24 = scalar_lea.sflag (!%p133_p10), [#allocation4], %s152_s4 }
  0x14   : > { %v1183_v0 = vld [vmem:[%s1711_s1 + $0x8] sm:$0xff]  ;;  %v1182_v1 = vld [vmem:[%s1711_s1] sm:$0xff]  ;;  %s1723_s25 = smov (!%p157_p11, %s976_s25), 127  ;;  %vm410_vm0 = vcmask 261120   ;;  %vm741_vm1 = vcmask 523264  }
  0x15   : > { %513 = vmatpush.bf16.msra.mxu0 %v1183_v0  ;;  %1184 = vmatpush.bf16.msra.mxu1 %v1183_v0  ;;  %s977_s28 = sshll.u32 %s1723_s25, 2  ;;  %s1261_s25 = sshra.s32 %s903_s20, 4  ;;  %s1262_s25 = int_to_ptr.hbm [resolvable:$true] %s1261_s25 }
  0x16   : > { %1185 = vmatpush.bf16.msra.mxu2 %v1183_v0  ;;  %1186 = vmatpush.bf16.msra.mxu3 %v1183_v0  ;;  %s1407_s3 = scalar_lea.vmem %s1710_s0, %s977_s28  ;;  %s1263_s26 = scalar_lea.hbm %s1262_s25, 8 }
  0x17   : > { %v1150_v2 = vld [vmem:[%s1407_s3] sm:$0xff]  ;;  %v1151_v4 = vld [vmem:[%s1407_s3 + $0x8] sm:$0xff]  ;;  %v1152_v7 = vld [vmem:[%s1407_s3 + $0x10] sm:$0xff]  ;;  %p1264_p12 = scmp.ne.s32.totalorder %s1262_s25, %s1263_s26  ;;  %s1267_s28 = scalar_lea.hbm %s1712_s2, 16 }
  0x18   : > { %v1158_v3 = vld [vmem:[%s1407_s3 + $0x40] sm:$0xff]  ;;  %v1159_v5 = vld [vmem:[%s1407_s3 + $0x48] sm:$0xff]  ;;  %v1160_v8 = vld [vmem:[%s1407_s3 + $0x50] sm:$0xff]  ;;  %p1268_p1 = scmp.lt.s32.totalorder %s1262_s25, %s1712_s2  ;;  %p1269_p2 = scmp.lt.s32.totalorder %s1267_s28, %s1263_s26 }
  0x19   : > { %514 = vmatpush.bf16.msra.mxu0 %v1182_v1  ;;  %1187 = vmatpush.bf16.msra.mxu1 %v1182_v1  ;;  %v1166_v6 = vld [vmem:[%s1407_s3 + $0x80] sm:$0xff]  ;;  %v1167_v9 = vld [vmem:[%s1407_s3 + $0x88] sm:$0xff]  ;;  %v1153_v10 = vld [vmem:[%s1407_s3 + $0x18] sm:$0xff]  ;;  %p1265_p13 = pnand %p1264_p12, %p1382_p4 }
  0x1a   : > { %1188 = vmatpush.bf16.msra.mxu2 %v1182_v1  ;;  %1189 = vmatpush.bf16.msra.mxu3 %v1182_v1  ;;  %v1161_v11 = vld [vmem:[%s1407_s3 + $0x58] sm:$0xff]  ;;  %v1168_v12 = vld [vmem:[%s1407_s3 + $0x90] sm:$0xff]  ;;  %v1174_v13 = vld [vmem:[%s1407_s3 + $0xc0] sm:$0xff]  ;;  %p1270_p3 = por %p1269_p2, %p1268_p1 }
  0x1b   : > { %v1154_v14 = vld [vmem:[%s1407_s3 + $0x20] sm:$0xff]  ;;  %v1169_v16 = vld [vmem:[%s1407_s3 + $0x98] sm:$0xff]  ;;  %v1175_v17 = vld [vmem:[%s1407_s3 + $0xc8] sm:$0xff]  ;;  %p1266_p0 = pneg %p1265_p13 }
  0x1c   : > { %1114 = vmatmul.msk.bf16.vlgmr.msra.gmra.mxu0 %vm410_vm0, %v1150_v2  ;;  %1122 = vmatmul.msk.bf16.vlgmr.msra.gmra.mxu1 %vm410_vm0, %v1158_v3  ;;  %v1162_v15 = vld [vmem:[%s1407_s3 + $0x60] sm:$0xff]  ;;  %v1155_v18 = vld [vmem:[%s1407_s3 + $0x28] sm:$0xff]  ;;  %v1176_v21 = vld [vmem:[%s1407_s3 + $0xd0] sm:$0xff] }
  0x1d   : > { %1130 = vmatmul.msk.bf16.vlgmr.msra.gmra.mxu2 %vm410_vm0, %v1166_v6  ;;  %1138 = vmatmul.msk.bf16.vlgmr.msra.gmra.mxu3 %vm410_vm0, %v1174_v13  ;;  %v1163_v19 = vld [vmem:[%s1407_s3 + $0x68] sm:$0xff]  ;;  %v1170_v20 = vld [vmem:[%s1407_s3 + $0xa0] sm:$0xff]  ;;  %v1156_v22 = vld [vmem:[%s1407_s3 + $0x30] sm:$0xff]  ;;  %p1271_p5 = pnand %p1270_p3, %p1266_p0 }
  0x1e   : > { %v1164_v23 = vld [vmem:[%s1407_s3 + $0x70] sm:$0xff]  ;;  %v1171_v24 = vld [vmem:[%s1407_s3 + $0xa8] sm:$0xff]  ;;  %v1177_v25 = vld [vmem:[%s1407_s3 + $0xd8] sm:$0xff] }
  0x1f   : > { %v1157_v26 = vld [vmem:[%s1407_s3 + $0x38] sm:$0xff]  ;;  %v1172_v28 = vld [vmem:[%s1407_s3 + $0xb0] sm:$0xff]  ;;  %v1178_v29 = vld [vmem:[%s1407_s3 + $0xe0] sm:$0xff] }
  0x20   : > { %v1165_v27 = vld [vmem:[%s1407_s3 + $0x78] sm:$0xff]  ;;  %v1179_v33 = vld [vmem:[%s1407_s3 + $0xe8] sm:$0xff]  ;;  %v1180_v45 = vld [vmem:[%s1407_s3 + $0xf0] sm:$0xff] }
  0x21   : > { %v1173_v32 = vld [vmem:[%s1407_s3 + $0xb8] sm:$0xff] }
  0x22   : > { %v1181_v56 = vld [vmem:[%s1407_s3 + $0xf8] sm:$0xff] }
  0x2c   : > { %1115 = vmatmul.msk.bf16.gmra.mxu0 %vm410_vm0, %v1151_v4  ;;  %1123 = vmatmul.msk.bf16.gmra.mxu1 %vm410_vm0, %v1159_v5 }
  0x2d   : > { %1131 = vmatmul.msk.bf16.gmra.mxu2 %vm410_vm0, %v1167_v9  ;;  %1139 = vmatmul.msk.bf16.gmra.mxu3 %vm410_vm0, %v1175_v17 }
  0x3c   : > { %1116 = vmatmul.msk.bf16.gmra.mxu0 %vm410_vm0, %v1152_v7  ;;  %1124 = vmatmul.msk.bf16.gmra.mxu1 %vm410_vm0, %v1160_v8 }
  0x3d   : > { %1132 = vmatmul.msk.bf16.gmra.mxu2 %vm410_vm0, %v1168_v12  ;;  %1140 = vmatmul.msk.bf16.gmra.mxu3 %vm410_vm0, %v1176_v21 }
  0x4c   : > { %1117 = vmatmul.msk.bf16.gmra.mxu0 %vm410_vm0, %v1153_v10  ;;  %1125 = vmatmul.msk.bf16.gmra.mxu1 %vm410_vm0, %v1161_v11 }
  0x4d   : > { %1133 = vmatmul.msk.bf16.gmra.mxu2 %vm410_vm0, %v1169_v16  ;;  %1141 = vmatmul.msk.bf16.gmra.mxu3 %vm410_vm0, %v1177_v25 }
  0x5c   : > { %1118 = vmatmul.msk.bf16.gmra.mxu0 %vm410_vm0, %v1154_v14  ;;  %1126 = vmatmul.msk.bf16.gmra.mxu1 %vm410_vm0, %v1162_v15 }
  0x5d   : > { %1134 = vmatmul.msk.bf16.gmra.mxu2 %vm410_vm0, %v1170_v20  ;;  %1142 = vmatmul.msk.bf16.gmra.mxu3 %vm410_vm0, %v1178_v29 }
  0x6c   : > { %1119 = vmatmul.msk.bf16.gmra.mxu0 %vm410_vm0, %v1155_v18  ;;  %1127 = vmatmul.msk.bf16.gmra.mxu1 %vm410_vm0, %v1163_v19 }
  0x6d   : > { %1135 = vmatmul.msk.bf16.gmra.mxu2 %vm410_vm0, %v1171_v24  ;;  %1143 = vmatmul.msk.bf16.gmra.mxu3 %vm410_vm0, %v1179_v33 }
  0x7c   : > { %1120 = vmatmul.msk.bf16.gmra.mxu0 %vm410_vm0, %v1156_v22  ;;  %1128 = vmatmul.msk.bf16.gmra.mxu1 %vm410_vm0, %v1164_v23 }
  0x7d   : > { %1136 = vmatmul.msk.bf16.gmra.mxu2 %vm410_vm0, %v1172_v28  ;;  %1144 = vmatmul.msk.bf16.gmra.mxu3 %vm410_vm0, %v1180_v45 }
  0x8c   : > { %1121 = vmatmul.msk.bf16.gmra.mxu0 %vm410_vm0, %v1157_v26  ;;  %1129 = vmatmul.msk.bf16.gmra.mxu1 %vm410_vm0, %v1165_v27 }
  0x8d   : > { %1137 = vmatmul.msk.bf16.gmra.mxu2 %vm410_vm0, %v1173_v32  ;;  %1145 = vmatmul.msk.bf16.gmra.mxu3 %vm410_vm0, %v1181_v56 }
  0x99   : > { %v516_v30 = vpop.f32.mrf.mxu0  ;;  %v1465_v31 = vpop.f32.mrf.mxu1 }
  0x9a   : > { %v677_v34 = vmul.f32 %v516_v30, %v516_v30 }
  0x9c   : > { %v742_v38 = vsel %vm741_vm1, %v677_v34, 0.0 }
  0xa0   : > { %v1483_v52 = vpop.f32.mrf.mxu2  ;;  %v1500_v3 = vpop.f32.mrf.mxu3 }
  0xa1   : > { %v518_v35 = vpop.f32.mrf.mxu0  ;;  %v1471_v36 = vpop.f32.mrf.mxu1 }
  0xa2   : > { %v678_v37 = vmul.f32 %v518_v35, %v518_v35 }
  0xa4   : > { %v743_v39 = vsel %vm741_vm1, %v678_v37, 0.0 }
  0xa5   : > { %v744_v40 = vadd.f32 %v743_v39, %v742_v38 }
  0xa8   : > { %v1490_v60 = vpop.f32.mrf.mxu2  ;;  %v1506_v8 = vpop.f32.mrf.mxu3 }
  0xa9   : > { %v521_v41 = vpop.f32.mrf.mxu0  ;;  %v1475_v43 = vpop.f32.mrf.mxu1 }
  0xaa   : > { %v679_v42 = vmul.f32 %v521_v41, %v521_v41 }
  0xac   : > { %v745_v44 = vsel %vm741_vm1, %v679_v42, 0.0 }
  0xad   : > { %v746_v46 = vadd.f32 %v745_v44, %v744_v40 }
  0xb0   : > { %v1494_v63 = vpop.f32.mrf.mxu2  ;;  %v1512_v12 = vpop.f32.mrf.mxu3 }
  0xb1   : > { %v523_v47 = vpop.f32.mrf.mxu0  ;;  %v1481_v51 = vpop.f32.mrf.mxu1 }
  0xb2   : > { %v680_v48 = vmul.f32 %v523_v47, %v523_v47 }
  0xb4   : > { %v747_v49 = vsel %vm741_vm1, %v680_v48, 0.0 }
  0xb5   : > { %v748_v50 = vadd.f32 %v747_v49, %v746_v46 }
  0xb8   : > { %v1498_v2 = vpop.f32.mrf.mxu2  ;;  %v1518_v16 = vpop.f32.mrf.mxu3 }
  0xb9   : > { %v526_v53 = vpop.f32.mrf.mxu0  ;;  %v1488_v58 = vpop.f32.mrf.mxu1 }
  0xba   : > { %v681_v54 = vmul.f32 %v526_v53, %v526_v53 }
  0xbc   : > { %v749_v55 = vsel %vm741_vm1, %v681_v54, 0.0 }
  0xbd   : > { %v750_v57 = vadd.f32 %v749_v55, %v748_v50 }
  0xc0   : > { %v1504_v6 = vpop.f32.mrf.mxu2  ;;  %v1525_v24 = vpop.f32.mrf.mxu3 }
  0xc1   : > { %v528_v59 = vpop.f32.mrf.mxu0  ;;  %v1492_v62 = vpop.f32.mrf.mxu1 }
  0xc2   : > { %v682_v18 = vmul.f32 %v528_v59, %v528_v59 }
  0xc4   : > { %v751_v22 = vsel %vm741_vm1, %v682_v18, 0.0 }
  0xc5   : > { %v752_v27 = vadd.f32 %v751_v22, %v750_v57 }
  0xc8   : > { %v1510_v11 = vpop.f32.mrf.mxu2  ;;  %v1536_v47 = vpop.f32.mrf.mxu3 }
  0xc9   : > { %v531_v61 = vpop.f32.mrf.mxu0  ;;  %v1496_v1 = vpop.f32.mrf.mxu1 }
  0xca   : > { %v683_v20 = vmul.f32 %v531_v61, %v531_v61 }
  0xcc   : > { %v753_v25 = vsel %vm741_vm1, %v683_v20, 0.0  ;;  %v694_v20 = vmul.f32 %v1471_v36, %v1471_v36  ;;  %v697_v36 = vmul.f32 %v1488_v58, %v1488_v58 }
  0xcd   : > { %v754_v32 = vadd.f32 %v753_v25, %v752_v27 }
  0xd0   : > { %v1516_v15 = vpop.f32.mrf.mxu2  ;;  %v1546_v18 = vpop.f32.mrf.mxu3 }
  0xd1   : > { %v533_v0 = vpop.f32.mrf.mxu0  ;;  %v1502_v5 = vpop.f32.mrf.mxu1 }
  0xd2   : > { %v684_v23 = vmul.f32 %v533_v0, %v533_v0  ;;  %v700_v58 = vmul.f32 %v1502_v5, %v1502_v5 }
  0xd4   : > { %v755_v29 = vsel %vm741_vm1, %v684_v23, 0.0 }
  0xd5   : > { %v756_v35 = vadd.f32 %v755_v29, %v754_v32 }
  0xd8   : > { %v1522_v21 = vpop.f32.mrf.mxu2 }
  0xd9   : > { %v536_v4 = vpop.f32.mrf.mxu0  ;;  %v1508_v9 = vpop.f32.mrf.mxu1 }
  0xda   : > { %v685_v26 = vmul.f32 %v536_v4, %v536_v4 }
  0xdc   : > { %v757_v33 = vsel %vm741_vm1, %v685_v26, 0.0  ;;  %v695_v26 = vmul.f32 %v1475_v43, %v1475_v43  ;;  %v698_v43 = vmul.f32 %v1492_v62, %v1492_v62  ;;  %v701_v62 = vmul.f32 %v1508_v9, %v1508_v9 }
  0xdd   : > { %v758_v40 = vadd.f32 %v757_v33, %v756_v35 }
  0xde   : > { %v777_v32 = vsel %vm741_vm1, %v695_v26, 0.0 }
  0xe0   : > { %v1533_v41 = vpop.f32.mrf.mxu2 }
  0xe1   : > { %v538_v7 = vpop.f32.mrf.mxu0  ;;  %v1514_v14 = vpop.f32.mrf.mxu1 }
  0xe2   : > { %v686_v30 = vmul.f32 %v538_v7, %v538_v7 }
  0xe4   : > { %v759_v38 = vsel %vm741_vm1, %v686_v30, 0.0 }
  0xe5   : > { %v760_v45 = vadd.f32 %v759_v38, %v758_v40  ;;  %v699_v40 = vmul.f32 %v1496_v1, %v1496_v1 }
  0xe8   : > { %v1542_v7 = vpop.f32.mrf.mxu2 }
  0xe9   : > { %v541_v10 = vpop.f32.mrf.mxu0  ;;  %v1520_v19 = vpop.f32.mrf.mxu1 }
  0xea   : > { %v687_v34 = vmul.f32 %v541_v10, %v541_v10  ;;  %v693_v10 = vmul.f32 %v1465_v31, %v1465_v31  ;;  %v696_v31 = vmul.f32 %v1481_v51, %v1481_v51  ;;  %v781_v51 = vsel %vm741_vm1, %v697_v36, 0.0 }
  0xeb   : > { %v703_v5 = vmul.f32 %v1520_v19, %v1520_v19 }
  0xec   : > { %v761_v42 = vsel %vm741_vm1, %v687_v34, 0.0  ;;  %v773_v25 = vsel %vm741_vm1, %v693_v10, 0.0  ;;  %v779_v35 = vsel %vm741_vm1, %v696_v31, 0.0 }
  0xed   : > { %v762_v50 = vadd.f32 %v761_v42, %v760_v45 }
  0xf0   : > { %v1560_v34 = vpop.f32.mrf.mxu2 }
  0xf1   : > { %v543_v13 = vpop.f32.mrf.mxu0  ;;  %v1530_v37 = vpop.f32.mrf.mxu1 }
  0xf2   : > { %v688_v39 = vmul.f32 %v543_v13, %v543_v13  ;;  %v704_v9 = vmul.f32 %v1530_v37, %v1530_v37 }
  0xf4   : > { %v763_v48 = vsel %vm741_vm1, %v688_v39, 0.0  ;;  %v1565_v39 = vpop.f32.mrf.mxu3 }
  0xf5   : > { %v764_v55 = vadd.f32 %v763_v48, %v762_v50  ;;  %v787_v50 = vsel %vm741_vm1, %v700_v58, 0.0 }
  0xf9   : > { %v546_v17 = vpop.f32.mrf.mxu0  ;;  %v586_v59 = vpop.f32.mrf.mxu1 }
  0xfa   : > { %v689_v44 = vmul.f32 %v546_v17, %v546_v17  ;;  %v705_v10 = vmul.f32 %v586_v59, %v586_v59  ;;  %v709_v59 = vmul.f32 %v1483_v52, %v1483_v52  ;;  %v712_v52 = vmul.f32 %v1498_v2, %v1498_v2 }
  0xfb   : > { %v715_v2 = vmul.f32 %v1516_v15, %v1516_v15 }
  0xfc   : > { %v765_v53 = vsel %vm741_vm1, %v689_v44, 0.0  ;;  %v783_v44 = vsel %vm741_vm1, %v698_v43, 0.0  ;;  %v797_v19 = vsel %vm741_vm1, %v705_v10, 0.0  ;;  %v711_v43 = vmul.f32 %v1494_v63, %v1494_v63 }
  0xfd   : > { %v766_v57 = vadd.f32 %v765_v53, %v764_v55  ;;  %v702_v53 = vmul.f32 %v1514_v14, %v1514_v14  ;;  %v789_v55 = vsel %vm741_vm1, %v701_v62, 0.0  ;;  %v714_v63 = vmul.f32 %v1510_v11, %v1510_v11 }
 0x101   : > { %v548_v28 = vpop.f32.mrf.mxu0  ;;  %v588_v30 = vpop.f32.mrf.mxu1 }
 0x102   : > { %v690_v49 = vmul.f32 %v548_v28, %v548_v28  ;;  %v775_v28 = vsel %vm741_vm1, %v694_v20, 0.0 }
 0x104   : > { %v767_v56 = vsel %vm741_vm1, %v690_v49, 0.0 }
 0x105   : > { %v768_v0 = vadd.f32 %v767_v56, %v766_v57  ;;  %v1582_v57 = vpop.f32.mrf.mxu3 }
 0x109   : > { %v551_v46 = vpop.f32.mrf.mxu0  ;;  %v591_v49 = vpop.f32.mrf.mxu1 }
 0x10a   : > { %v691_v54 = vmul.f32 %v551_v46, %v551_v46  ;;  %v785_v46 = vsel %vm741_vm1, %v699_v40, 0.0 }
 0x10c   : > { %v769_v61 = vsel %vm741_vm1, %v691_v54, 0.0  ;;  %v623_v54 = vpop.f32.mrf.mxu2 }
 0x10d   : > { %v770_v17 = vadd.f32 %v769_v61, %v768_v0  ;;  %v791_v61 = vsel %vm741_vm1, %v702_v53, 0.0  ;;  %v1591_v37 = vpop.f32.mrf.mxu3 }
 0x111   : > { %v553_v4 = vpop.f32.mrf.mxu0 }
 0x112   : > { %v692_v13 = vmul.f32 %v553_v4, %v553_v4  ;;  %v793_v4 = vsel %vm741_vm1, %v703_v5, 0.0 }
 0x114   : > { %v771_v22 = vsel %vm741_vm1, %v692_v13, 0.0  ;;  %v795_v13 = vsel %vm741_vm1, %v704_v9, 0.0  ;;  %v626_v26 = vpop.f32.mrf.mxu2 }
 0x115   : > { %v772_v23 = vadd.f32 %v771_v22, %v770_v17  ;;  %v706_v17 = vmul.f32 %v588_v30, %v588_v30  ;;  %v593_v22 = vpop.f32.mrf.mxu1  ;;  %v710_v30 = vmul.f32 %v1490_v60, %v1490_v60  ;;  %v713_v60 = vmul.f32 %v1504_v6, %v1504_v6 }
 0x116   : > { %v716_v6 = vmul.f32 %v1522_v21, %v1522_v21  ;;  %v719_v21 = vmul.f32 %v1560_v34, %v1560_v34 }
 0x117   : > { %v774_v27 = vadd.f32 %v773_v25, %v772_v23  ;;  %v707_v23 = vmul.f32 %v591_v49, %v591_v49 }
 0x119   : > { %v776_v29 = vadd.f32 %v775_v28, %v774_v27  ;;  %v799_v27 = vsel %vm741_vm1, %v706_v17, 0.0  ;;  %v708_v28 = vmul.f32 %v593_v22, %v593_v22  ;;  %v721_v17 = vmul.f32 %v626_v26, %v626_v26 }
 0x11b   : > { %v778_v33 = vadd.f32 %v777_v32, %v776_v29  ;;  %v801_v29 = vsel %vm741_vm1, %v707_v23, 0.0  ;;  %v803_v36 = vsel %vm741_vm1, %v708_v28, 0.0 }
 0x11d   : > { %v780_v38 = vadd.f32 %v779_v35, %v778_v33  ;;  %v805_v35 = vsel %vm741_vm1, %v709_v59, 0.0 }
 0x11f   : > { %v782_v42 = vadd.f32 %v781_v51, %v780_v38  ;;  %v807_v51 = vsel %vm741_vm1, %v710_v30, 0.0  ;;  %v726_v30 = vmul.f32 %v1506_v8, %v1506_v8  ;;  %v729_v8 = vmul.f32 %v1525_v24, %v1525_v24 }
 0x121   : > { %v784_v45 = vadd.f32 %v783_v44, %v782_v42  ;;  %v628_v42 = vpop.f32.mrf.mxu2  ;;  %v809_v44 = vsel %vm741_vm1, %v711_v43, 0.0  ;;  %v727_v43 = vmul.f32 %v1512_v12, %v1512_v12 }
 0x123   : > { %v786_v48 = vadd.f32 %v785_v46, %v784_v45  ;;  %v1608_v45 = vpop.f32.mrf.mxu3  ;;  %v811_v46 = vsel %vm741_vm1, %v712_v52, 0.0 }
 0x125   : > { %v788_v1 = vadd.f32 %v787_v50, %v786_v48  ;;  %v813_v48 = vsel %vm741_vm1, %v713_v60, 0.0  ;;  %v815_v50 = vsel %vm741_vm1, %v714_v63, 0.0  ;;  %v731_v63 = vmul.f32 %v1546_v18, %v1546_v18 }
 0x127   : > { %v790_v56 = vadd.f32 %v789_v55, %v788_v1  ;;  %v817_v1 = vsel %vm741_vm1, %v715_v2, 0.0  ;;  %v717_v55 = vmul.f32 %v1533_v41, %v1533_v41  ;;  %v825_v41 = vsel %vm741_vm1, %v719_v21, 0.0 }
 0x128   : > { %v849_v24 = vsel %vm741_vm1, %v731_v63, 0.0 }
 0x129   : > { %v792_v0 = vadd.f32 %v791_v61, %v790_v56  ;;  %v631_v11 = vpop.f32.mrf.mxu2  ;;  %v819_v56 = vsel %vm741_vm1, %v716_v6, 0.0  ;;  %v718_v61 = vmul.f32 %v1542_v7, %v1542_v7 }
 0x12b   : > { %v794_v14 = vadd.f32 %v793_v4, %v792_v0  ;;  %v663_v9 = vpop.f32.mrf.mxu3  ;;  %v821_v0 = vsel %vm741_vm1, %v717_v55, 0.0  ;;  %v823_v10 = vsel %vm741_vm1, %v718_v61, 0.0  ;;  %v735_v55 = vmul.f32 %v1608_v45, %v1608_v45 }
 0x12d   : > { %v796_v20 = vadd.f32 %v795_v13, %v794_v14  ;;  %v720_v14 = vmul.f32 %v623_v54, %v623_v54  ;;  %v725_v54 = vmul.f32 %v1500_v3, %v1500_v3  ;;  %v728_v3 = vmul.f32 %v1518_v16, %v1518_v16 }
 0x12f   : > { %v798_v25 = vadd.f32 %v797_v19, %v796_v20  ;;  %v827_v22 = vsel %vm741_vm1, %v720_v14, 0.0  ;;  %v722_v19 = vmul.f32 %v628_v42, %v628_v42  ;;  %v841_v42 = vsel %vm741_vm1, %v727_v43, 0.0 }
 0x130   : > { %v843_v60 = vsel %vm741_vm1, %v728_v3, 0.0 }
 0x131   : > { %v800_v31 = vadd.f32 %v799_v27, %v798_v25  ;;  %v633_v23 = vpop.f32.mrf.mxu2  ;;  %v829_v25 = vsel %vm741_vm1, %v721_v17, 0.0  ;;  %v723_v27 = vmul.f32 %v631_v11, %v631_v11  ;;  %v831_v34 = vsel %vm741_vm1, %v722_v19, 0.0 }
 0x132   : > { %v724_v59 = vmul.f32 %v633_v23, %v633_v23  ;;  %v736_v11 = vmul.f32 %v663_v9, %v663_v9 }
 0x133   : > { %v802_v32 = vadd.f32 %v801_v29, %v800_v31  ;;  %v666_v31 = vpop.f32.mrf.mxu3  ;;  %v833_v26 = vsel %vm741_vm1, %v723_v27, 0.0 }
 0x134   : > { %v737_v61 = vmul.f32 %v666_v31, %v666_v31 }
 0x135   : > { %v804_v33 = vadd.f32 %v803_v36, %v802_v32  ;;  %v835_v36 = vsel %vm741_vm1, %v724_v59, 0.0 }
 0x137   : > { %v806_v38 = vadd.f32 %v805_v35, %v804_v33  ;;  %v837_v35 = vsel %vm741_vm1, %v725_v54, 0.0 }
 0x139   : > { %v808_v40 = vadd.f32 %v807_v51, %v806_v38  ;;  %v839_v51 = vsel %vm741_vm1, %v726_v30, 0.0 }
 0x13b   : > { %v810_v58 = vadd.f32 %v809_v44, %v808_v40  ;;  %v668_v40 = vpop.f32.mrf.mxu3 }
 0x13c   : > { %v738_v21 = vmul.f32 %v668_v40, %v668_v40 }
 0x13d   : > { %v812_v62 = vadd.f32 %v811_v46, %v810_v58  ;;  %v730_v58 = vmul.f32 %v1536_v47, %v1536_v47  ;;  %v845_v46 = vsel %vm741_vm1, %v729_v8, 0.0 }
 0x13e   : > { %v863_v45 = vsel %vm741_vm1, %v738_v21, 0.0 }
 0x13f   : > { %v814_v49 = vadd.f32 %v813_v48, %v812_v62  ;;  %v847_v62 = vsel %vm741_vm1, %v730_v58, 0.0  ;;  %v732_v48 = vmul.f32 %v1565_v39, %v1565_v39 }
 0x141   : > { %v816_v53 = vadd.f32 %v815_v50, %v814_v49  ;;  %v733_v49 = vmul.f32 %v1582_v57, %v1582_v57  ;;  %v851_v6 = vsel %vm741_vm1, %v732_v48, 0.0  ;;  %v857_v57 = vsel %vm741_vm1, %v735_v55, 0.0 }
 0x143   : > { %v818_v5 = vadd.f32 %v817_v1, %v816_v53  ;;  %v671_v47 = vpop.f32.mrf.mxu3  ;;  %v734_v53 = vmul.f32 %v1591_v37, %v1591_v37  ;;  %v853_v1 = vsel %vm741_vm1, %v733_v49, 0.0 }
 0x144   : > { %v739_v14 = vmul.f32 %v671_v47, %v671_v47 }
 0x145   : > { %v820_v15 = vadd.f32 %v819_v56, %v818_v5  ;;  %v855_v5 = vsel %vm741_vm1, %v734_v53, 0.0 }
 0x146   : > { %v865_v9 = vsel %vm741_vm1, %v739_v14, 0.0 }
 0x147   : > { %v822_v4 = vadd.f32 %v821_v0, %v820_v15  ;;  %v859_v0 = vsel %vm741_vm1, %v736_v11, 0.0 }
 0x149   : > { %v824_v13 = vadd.f32 %v823_v10, %v822_v4  ;;  %v861_v10 = vsel %vm741_vm1, %v737_v61, 0.0 }
 0x14b   : > { %v826_v20 = vadd.f32 %v825_v41, %v824_v13  ;;  %v673_v37 = vpop.f32.mrf.mxu3 }
 0x14c   : > { %v740_v41 = vmul.f32 %v673_v37, %v673_v37 }
 0x14d   : > { %v828_v7 = vadd.f32 %v827_v22, %v826_v20 }
 0x14e   : > { %v867_v22 = vsel %vm741_vm1, %v740_v41, 0.0 }
 0x14f   : > { %v830_v28 = vadd.f32 %v829_v25, %v828_v7 }
 0x151   : > { %v832_v29 = vadd.f32 %v831_v34, %v830_v28 }
 0x153   : > { %v834_v32 = vadd.f32 %v833_v26, %v832_v29 }
 0x155   : > { %v836_v33 = vadd.f32 %v835_v36, %v834_v32 }
 0x157   : > { %v838_v38 = vadd.f32 %v837_v35, %v836_v33 }
 0x159   : > { %v840_v52 = vadd.f32 %v839_v51, %v838_v38 }
 0x15b   : > { %v842_v44 = vadd.f32 %v841_v42, %v840_v52 }
 0x15d   : > { %v844_v12 = vadd.f32 %v843_v60, %v842_v44 }
 0x15f   : > { %v846_v16 = vadd.f32 %v845_v46, %v844_v12 }
 0x161   : > { %v848_v2 = vadd.f32 %v847_v62, %v846_v16 }
 0x163   : > { %v850_v50 = vadd.f32 %v849_v24, %v848_v2 }
 0x165   : > { %v852_v18 = vadd.f32 %v851_v6, %v850_v50 }
 0x167   : > { %v854_v39 = vadd.f32 %v853_v1, %v852_v18 }
 0x169   : > { %v856_v56 = vadd.f32 %v855_v5, %v854_v39 }
 0x16b   : > { %v858_v15 = vadd.f32 %v857_v57, %v856_v56 }
 0x16d   : > { %v860_v4 = vadd.f32 %v859_v0, %v858_v15 }
 0x16f   : > { %v862_v13 = vadd.f32 %v861_v10, %v860_v4 }
 0x171   : > { %v864_v17 = vadd.f32 %v863_v45, %v862_v13 }
 0x173   : > { %v866_v20 = vadd.f32 %v865_v9, %v864_v17 }
 0x175   : > { %v868_v19 = vadd.f32 %v867_v22, %v866_v20 }
 0x177   : > { %869 = vadd.xlane.f32.xlu0 %v868_v19 }
 0x1ea   : > { %v870_v7 = vpop.xlane.xlu0 %869 }
 0x1eb   : > { %v871_v23 = vrot.slane %v870_v7, 4 }
 0x1ed   : > { %v872_v25 = vadd.f32 %v871_v23, %v870_v7 }
 0x1ef   : > { %v873_v27 = vrot.slane %v872_v25, 2 }
 0x1f1   : > { %v874_v28 = vadd.f32 %v873_v27, %v872_v25 }
 0x1f3   : > { %v875_v31 = vrot.slane %v874_v28, 1 }
 0x1f5   : > { %v876_v34 = vadd.f32 %v875_v31, %v874_v28 }
 0x1f7   : > { %1190 = vpush %v876_v34 }
 0x228   : > { %s1191_s23 = spop %1190 }
 0x229   : > { %v885_v59 = vstv %s1191_s23 }
 0x22a   : > { %886 = vst [vmem:[%s154_s16] sm:$0xff] %v885_v59 }
 0x22b   : > { %1274 = shalt.err (!%p1271_p5)
}
 0x22c   : > { %1192 = dma.vmem_to_hbm [thread:$0]  (%p1382_p4), %s901_s18, 128, %s903_s20, %s888_s24  }
 0x22d PF: > { %p1198_p6 = scmp.ge.s32.totalorder %s1325_s14, 2  ;;  %s914_s3 = sand.u32 1, %s1305_s9  }
 0x22e   : > { %s915_s4 = scalar_lea.sflag [#allocation4], %s914_s3 }
 0x22f   : > { %p1195_p7 = pnand %p1198_p6, %p1389_p8 }
 0x231   : > { %p1196_p9 = pneg %p1195_p7 }
 0x233   : > { %1300 = dma.done.wait (%p1196_p9), %s915_s4, 128  }
 0x234   : > { %1302 = vsyncadd (%p1196_p9), %s915_s4, 4294967168  ;;  %s15_s14 = sadd.s32 1, %s1325_s14   ;;  %s1715_s9 = smov %s1309_s10 }
 0x235   : > { %p12_p10 = scmp.ge.s32.totalorder %s15_s14, 4   ;;  %s1716_s10 = smov %s1313_s11 }
 0x236   : > { %s1717_s11 = smov %s1395_s22  ;;  %s1718_s12 = smov %s1321_s13 }
 0x237   : > { %s1719_s13 = smov %s1721_s17  ;;  %14 = sbr.rel (!%p12_p10) target bundleno = 4 (0x4), region = 73 }
 0x23c   :  { %921 = vsyncpa [#allocation4], 1 }
 0x23d   :  { %923 = vsyncpa [#allocation4 + $0x1], 1 }

</bundles_post_ra>
